<compile_context>
chip_gen: v6e
topology: v6e:2x2x1
jax: 0.10.0
libtpu: 0.0.40
codegen_flags: <defaults>
</compile_context>

<pallas_src>
import functools

import jax
import jax.numpy as jnp
import numpy as np
from jax import lax
from jax.experimental import pallas as pl
from jax.experimental.pallas import tpu as pltpu

_COMPUTE_DTYPE = jnp.bfloat16   # set to jnp.float32 on v5e if preferred


# ------------------------------- Pallas kernel -------------------------------
def _inverted_residual_kernel(x_ref, w1_ref, b1_ref, wd_ref, bd_ref,
                              wcat_ref, b3_ref, mwl_ref, mwr_ref, mhu_ref,
                              mhd_ref, even_ref, out_ref, *, W):
    # x_ref   : (C, HW)   one image; rows [0,Cb) = x1 (identity), [Cb,C) = x2
    # w1_ref  : (Cb, Cb)  first 1x1 conv (BN scale folded), compute dtype
    # b1_ref  : (Cb, 1)   folded BN bias, f32
    # wd_ref  : (Cb, 9)   depthwise 3x3 taps (BN scale folded), f32
    # bd_ref  : (Cb, 1)   folded BN bias (no ReLU after depthwise), f32
    # wcat_ref: (C, 2Cb)  merged final 1x1 conv (odd rows) + exact identity
    #                     scatter of x1 (even rows), compute dtype
    # b3_ref  : (C, 1)    folded BN bias on odd rows, 0 on even rows, f32
    # m*_ref  : (1, HW)   precomputed 0/1 boundary masks, f32
    # even_ref: (C, 1)    1.0 on even rows, 0.0 on odd rows (ReLU gate), f32
    # out_ref : (C, HW)   channel-shuffled output
    C, HW = x_ref.shape
    Cb = C // 2

    x = x_ref[...]                      # (C, HW) compute dtype
    x1 = x[:Cb]                         # identity branch -> even output rows
    x2 = x[Cb:]                         # branch2 input

    # ---- 1x1 conv -> folded BN -> ReLU (MXU, f32 accumulation) ----
    t = jnp.dot(w1_ref[...], x2, preferred_element_type=jnp.float32)
    t = jnp.maximum(t + b1_ref[...], 0.0)                 # (Cb, HW) f32

    # ---- depthwise 3x3, stride 1, pad 1: lane rolls (XLU) + hoisted masks ----
    wd = wd_ref[...]                                       # (Cb, 9) f32
    mw_l = mwl_ref[...]                                    # col > 0
    mw_r = mwr_ref[...]                                    # col < W-1
    mh_u = mhu_ref[...]                                    # row > 0
    mh_d = mhd_ref[...]                                    # row < H-1

    def rot(a, s):                                         # rot(a, s)[p] = a[p+s]
        return pltpu.roll(a, (-s) % HW, 1)

    tl = rot(t, -1) * mw_l                                 # left neighbour, col-masked
    tr = rot(t, +1) * mw_r                                 # right neighbour, col-masked
    row_u = (rot(tl, -W) * wd[:, 0:1] + rot(t, -W) * wd[:, 1:2]
             + rot(tr, -W) * wd[:, 2:3]) * mh_u
    row_c = tl * wd[:, 3:4] + t * wd[:, 4:5] + tr * wd[:, 5:6]
    row_d = (rot(tl, +W) * wd[:, 6:7] + rot(t, +W) * wd[:, 7:8]
             + rot(tr, +W) * wd[:, 8:9]) * mh_d
    d = row_u + row_c + row_d + bd_ref[...]                # (Cb, HW) f32, no ReLU

    # ---- final 1x1 conv + BN + ReLU fused with cat + channel_shuffle(2) ----
    # Single K = 2*Cb matmul: columns [0,Cb) carry the conv onto odd output
    # rows, columns [Cb,2Cb) carry the exact 0/1 identity of x1 onto even rows.
    v = jnp.concatenate([d.astype(x.dtype), x1], axis=0)   # (2Cb, HW)
    z = (jnp.dot(wcat_ref[...], v, preferred_element_type=jnp.float32)
         + b3_ref[...])
    # ReLU on odd rows only: even=1 -> max(z, z) = z ; even=0 -> max(z, 0).
    out_ref[...] = jnp.maximum(z, z * even_ref[...]).astype(out_ref.dtype)


# ------------------------------- parameter folding -------------------------------
def _fold_params(params, compute_dtype):
    """Fold BN running stats into conv weights and build the merged
    (final 1x1 conv + identity + channel_shuffle) matrix."""
    w1, s1, b1, wdw, s2, b2, w3, s3, b3 = params
    Cb = w1.shape[0]
    C = 2 * Cb
    w1f = (w1 * s1[:, None]).astype(compute_dtype)                 # (Cb, Cb)
    b1c = b1.reshape(Cb, 1).astype(jnp.float32)
    wdf = (wdw * s2[:, None, None]).reshape(Cb, 9).astype(jnp.float32)
    bdc = b2.reshape(Cb, 1).astype(jnp.float32)
    # merged final matmul (C, 2Cb): cols [0,Cb) act on d -> odd rows,
    # cols [Cb,2Cb) carry the 0/1 identity of x1 -> even rows.
    wcat = jnp.zeros((C, 2 * Cb), jnp.float32)
    wcat = wcat.at[1::2, :Cb].set(w3 * s3[:, None])
    wcat = wcat.at[0::2, Cb:].set(jnp.eye(Cb, dtype=jnp.float32))
    wcat = wcat.astype(compute_dtype)
    b3c = jnp.zeros((C, 1), jnp.float32).at[1::2, 0].set(b3)
    evenc = jnp.zeros((C, 1), jnp.float32).at[0::2, 0].set(1.0)
    return w1f, b1c, wdf, bdc, wcat, b3c, evenc


# ------------------------------- module wrapper -------------------------------
@jax.jit
def inverted_residual_forward(x, params):
    """stride=1, padding=1, dilation=1, branch1_flag=False forward pass."""
    N, C, H, W = x.shape
    HW = H * W
    Cb = C // 2

    compute_dtype = _COMPUTE_DTYPE
    if compute_dtype == jnp.bfloat16 and Cb % 16 != 0:
        compute_dtype = jnp.float32        # keep bf16 sublane splits aligned

    w1f, b1c, wdf, bdc, wcat, b3c, evenc = _fold_params(params, compute_dtype)

    # Hoisted boundary masks (1/0 floats), built once host-side.
    col = jnp.arange(HW, dtype=jnp.int32) % W
    row = jnp.arange(HW, dtype=jnp.int32) // W
    mwl = (col > 0).astype(jnp.float32).reshape(1, HW)
    mwr = (col < W - 1).astype(jnp.float32).reshape(1, HW)
    mhu = (row > 0).astype(jnp.float32).reshape(1, HW)
    mhd = (row < H - 1).astype(jnp.float32).reshape(1, HW)

    x3 = x.reshape(N, C, HW).astype(compute_dtype)         # free dim merge + cast

    kernel = functools.partial(_inverted_residual_kernel, W=W)
    const = lambda a: pl.BlockSpec(a.shape, lambda n: (0,) * a.ndim)

    act_bytes = np.dtype(compute_dtype).itemsize
    flops = int(N * (2 * Cb * Cb * HW          # first 1x1 conv
                     + 2 * C * 2 * Cb * HW     # merged final 1x1 conv
                     + 24 * Cb * HW))          # depthwise VALU work
    bytes_accessed = int(
        2 * N * C * HW * act_bytes
        + (w1f.size + wcat.size) * act_bytes
        + (b1c.size + wdf.size + bdc.size + b3c.size + evenc.size + 4 * HW) * 4)

    out3 = pl.pallas_call(
        kernel,
        out_shape=jax.ShapeDtypeStruct((N, C, HW), compute_dtype),
        grid_spec=pltpu.PrefetchScalarGridSpec(
            num_scalar_prefetch=0,
            grid=(N,),
            in_specs=[
                pl.BlockSpec((pl.Squeezed(), C, HW), lambda n: (n, 0, 0)),  # x
                const(w1f), const(b1c), const(wdf), const(bdc),
                const(wcat), const(b3c),
                const(mwl), const(mwr), const(mhu), const(mhd),
                const(evenc),
            ],
            out_specs=pl.BlockSpec((pl.Squeezed(), C, HW), lambda n: (n, 0, 0)),
        ),
        compiler_params=pltpu.CompilerParams(
            dimension_semantics=("parallel",)),
        cost_estimate=pl.CostEstimate(flops=flops, transcendentals=0,
                                      bytes_accessed=bytes_accessed),
    )(x3, w1f, b1c, wdf, bdc, wcat, b3c, mwl, mwr, mhu, mhd, evenc)
    return out3.reshape(N, C, H, W)                        # free dim split


# ------------------------------- parameter setup -------------------------------
def make_params(Cb, key):
    k1, k2, k3 = jax.random.split(key, 3)
    # PyTorch 1x1 conv weights (Cout, Cin, 1, 1) -> (Cout, Cin)
    w1 = jax.random.normal(k1, (Cb, Cb), jnp.float32) * 0.1
    w3 = jax.random.normal(k3, (Cb, Cb), jnp.float32) * 0.1
    # depthwise (Cb, 1, 3, 3) -> (Cb, 3, 3)
    wdw = jax.random.normal(k2, (Cb, 3, 3), jnp.float32) * 0.1

    def folded_bn(idx):
        c = jnp.arange(Cb, dtype=jnp.float32)
        gamma = 1.0 + 0.01 * (c + idx)
        beta = 0.01 * (c - idx)
        mean = 0.05 * (c + 2 * idx)
        var = 1.0 + 0.02 * c
        scale = gamma / jnp.sqrt(var + 1e-5)
        bias = beta - mean * scale
        return scale, bias

    s1, b1 = folded_bn(0)
    s2, b2 = folded_bn(1)
    s3, b3 = folded_bn(2)
    return (w1, s1, b1, wdw, s2, b2, w3, s3, b3)


# ------------------------------- pure-JAX reference -------------------------------
def reference_forward(x, params):
    w1, s1, b1, wdw, s2, b2, w3, s3, b3 = params
    N, C, H, W = x.shape
    Cb = C // 2
    x1, x2 = x[:, :Cb], x[:, Cb:]
    bc = lambda v: v[None, :, None, None]

    t = jnp.einsum('oi,nihw->nohw', w1, x2)
    t = jnp.maximum(t * bc(s1) + bc(b1), 0.0)
    t = lax.conv_general_dilated(
        t, wdw.reshape(Cb, 1, 3, 3), (1, 1), ((1, 1), (1, 1)),
        dimension_numbers=('NCHW', 'OIHW', 'NCHW'),
        feature_group_count=Cb)
    t = t * bc(s2) + bc(b2)
    u = jnp.einsum('oi,nihw->nohw', w3, t)
    u = jnp.maximum(u * bc(s3) + bc(b3), 0.0)
    # cat([x1, u], dim=1) + channel_shuffle(groups=2) interleaves channels
    return jnp.stack([x1, u], axis=2).reshape(N, C, H, W)


if __name__ == "__main__":
    key = jax.random.PRNGKey(0)
    kx, kp = jax.random.split(key)

    N, C, H, W = 2, 32, 16, 16            # inp == oup == 32 -> branch_features = 16
    x = jax.random.normal(kx, (N, C, H, W), jnp.float32)
    params = make_params(C // 2, kp)

    out = jax.block_until_ready(inverted_residual_forward(x, params))
    ref = jax.block_until_ready(reference_forward(x, params))

    assert out.shape == (N, C, H, W)
    # Kernel carries bf16 activations/weights (f32 accumulation); reference is
    # full f32, hence the loose tolerance.
    np.testing.assert_allclose(np.asarray(out.astype(jnp.float32)),
                               np.asarray(ref), rtol=3e-2, atol=3e-2)
    print("KERNEL_OK")
</pallas_src>

<mosaic_0001>
module attributes {stable_mosaic.version = 11 : i64} {
  func.func @_inverted_residual_kernel(%arg0: i32, %arg1: memref<1x32x256xbf16, #tpu.memory_space<vmem>>, %arg2: memref<16x16xbf16, #tpu.memory_space<vmem>>, %arg3: memref<16x1xf32, #tpu.memory_space<vmem>>, %arg4: memref<16x9xf32, #tpu.memory_space<vmem>>, %arg5: memref<16x1xf32, #tpu.memory_space<vmem>>, %arg6: memref<32x32xbf16, #tpu.memory_space<vmem>>, %arg7: memref<32x1xf32, #tpu.memory_space<vmem>>, %arg8: memref<1x256xf32, #tpu.memory_space<vmem>>, %arg9: memref<1x256xf32, #tpu.memory_space<vmem>>, %arg10: memref<1x256xf32, #tpu.memory_space<vmem>>, %arg11: memref<1x256xf32, #tpu.memory_space<vmem>>, %arg12: memref<32x1xf32, #tpu.memory_space<vmem>>, %arg13: memref<1x32x256xbf16, #tpu.memory_space<vmem>>) attributes {dimension_semantics = [#tpu.dimension_semantics<parallel>], iteration_bounds = array<i64: 2>, scalar_prefetch = 0 : i64, scratch_operands = 0 : i64, tpu.core_type = #tpu.core_type<tc>, window_params = [{transform_indices = @transform_0, window_bounds = array<i64: 1, 32, 256>}, {pipeline_mode = #tpu.pipeline_mode<synchronous>, transform_indices = @transform_1, window_bounds = array<i64: 16, 16>}, {pipeline_mode = #tpu.pipeline_mode<synchronous>, transform_indices = @transform_2, window_bounds = array<i64: 16, 1>}, {pipeline_mode = #tpu.pipeline_mode<synchronous>, transform_indices = @transform_3, window_bounds = array<i64: 16, 9>}, {pipeline_mode = #tpu.pipeline_mode<synchronous>, transform_indices = @transform_4, window_bounds = array<i64: 16, 1>}, {pipeline_mode = #tpu.pipeline_mode<synchronous>, transform_indices = @transform_5, window_bounds = array<i64: 32, 32>}, {pipeline_mode = #tpu.pipeline_mode<synchronous>, transform_indices = @transform_6, window_bounds = array<i64: 32, 1>}, {pipeline_mode = #tpu.pipeline_mode<synchronous>, transform_indices = @transform_7, window_bounds = array<i64: 1, 256>}, {pipeline_mode = #tpu.pipeline_mode<synchronous>, transform_indices = @transform_8, window_bounds = array<i64: 1, 256>}, {pipeline_mode = #tpu.pipeline_mode<synchronous>, transform_indices = @transform_9, window_bounds = array<i64: 1, 256>}, {pipeline_mode = #tpu.pipeline_mode<synchronous>, transform_indices = @transform_10, window_bounds = array<i64: 1, 256>}, {pipeline_mode = #tpu.pipeline_mode<synchronous>, transform_indices = @transform_11, window_bounds = array<i64: 32, 1>}, {transform_indices = @transform_12, window_bounds = array<i64: 1, 32, 256>}]} {
    %c0 = arith.constant 0 : index
    %c0_0 = arith.constant 0 : index
    %c0_1 = arith.constant 0 : index
    %0 = vector.load %arg1[%c0, %c0_0, %c0_1] : memref<1x32x256xbf16, #tpu.memory_space<vmem>>, vector<1x32x256xbf16>
    %1 = vector.shape_cast %0 : vector<1x32x256xbf16> to vector<32x256xbf16>
    %2 = vector.extract_strided_slice %1 {offsets = [0, 0], sizes = [16, 256], strides = [1, 1]} : vector<32x256xbf16> to vector<16x256xbf16>
    %3 = vector.extract_strided_slice %1 {offsets = [16, 0], sizes = [16, 256], strides = [1, 1]} : vector<32x256xbf16> to vector<16x256xbf16>
    %c0_2 = arith.constant 0 : index
    %c0_3 = arith.constant 0 : index
    %4 = vector.load %arg2[%c0_2, %c0_3] : memref<16x16xbf16, #tpu.memory_space<vmem>>, vector<16x16xbf16>
    %cst = arith.constant dense<0.000000e+00> : vector<16x256xf32>
    %5 = tpu.matmul %4, %3, %cst {dimension_numbers = #tpu.dot_dimension_numbers<[1], [0], [0], [1], [0, 0, 1, 1], [], []>} : vector<16x16xbf16>, vector<16x256xbf16>, vector<16x256xf32> -> vector<16x256xf32>
    %c0_4 = arith.constant 0 : index
    %c0_5 = arith.constant 0 : index
    %6 = vector.load %arg3[%c0_4, %c0_5] : memref<16x1xf32, #tpu.memory_space<vmem>>, vector<16x1xf32>
    %7 = vector.broadcast %6 : vector<16x1xf32> to vector<16x256xf32>
    %8 = arith.addf %5, %7 : vector<16x256xf32>
    %cst_6 = arith.constant 0.000000e+00 : f32
    %9 = vector.broadcast %cst_6 : f32 to vector<16x256xf32>
    %10 = arith.maximumf %8, %9 : vector<16x256xf32>
    %c0_7 = arith.constant 0 : index
    %c0_8 = arith.constant 0 : index
    %11 = vector.load %arg4[%c0_7, %c0_8] : memref<16x9xf32, #tpu.memory_space<vmem>>, vector<16x9xf32>
    %c0_9 = arith.constant 0 : index
    %c0_10 = arith.constant 0 : index
    %12 = vector.load %arg8[%c0_9, %c0_10] : memref<1x256xf32, #tpu.memory_space<vmem>>, vector<1x256xf32>
    %c0_11 = arith.constant 0 : index
    %c0_12 = arith.constant 0 : index
    %13 = vector.load %arg9[%c0_11, %c0_12] : memref<1x256xf32, #tpu.memory_space<vmem>>, vector<1x256xf32>
    %c0_13 = arith.constant 0 : index
    %c0_14 = arith.constant 0 : index
    %14 = vector.load %arg10[%c0_13, %c0_14] : memref<1x256xf32, #tpu.memory_space<vmem>>, vector<1x256xf32>
    %c0_15 = arith.constant 0 : index
    %c0_16 = arith.constant 0 : index
    %15 = vector.load %arg11[%c0_15, %c0_16] : memref<1x256xf32, #tpu.memory_space<vmem>>, vector<1x256xf32>
    %c1_i32 = arith.constant 1 : i32
    %16 = tpu.dynamic_rotate %10 by %c1_i32 dim 1 : vector<16x256xf32>, i32 -> vector<16x256xf32>
    %17 = vector.broadcast %12 : vector<1x256xf32> to vector<16x256xf32>
    %18 = arith.mulf %16, %17 : vector<16x256xf32>
    %c255_i32 = arith.constant 255 : i32
    %19 = tpu.dynamic_rotate %10 by %c255_i32 dim 1 : vector<16x256xf32>, i32 -> vector<16x256xf32>
    %20 = vector.broadcast %13 : vector<1x256xf32> to vector<16x256xf32>
    %21 = arith.mulf %19, %20 : vector<16x256xf32>
    %c16_i32 = arith.constant 16 : i32
    %22 = tpu.dynamic_rotate %18 by %c16_i32 dim 1 : vector<16x256xf32>, i32 -> vector<16x256xf32>
    %23 = vector.extract_strided_slice %11 {offsets = [0, 0], sizes = [16, 1], strides = [1, 1]} : vector<16x9xf32> to vector<16x1xf32>
    %24 = vector.broadcast %23 : vector<16x1xf32> to vector<16x256xf32>
    %25 = arith.mulf %22, %24 : vector<16x256xf32>
    %c16_i32_17 = arith.constant 16 : i32
    %26 = tpu.dynamic_rotate %10 by %c16_i32_17 dim 1 : vector<16x256xf32>, i32 -> vector<16x256xf32>
    %27 = vector.extract_strided_slice %11 {offsets = [0, 1], sizes = [16, 1], strides = [1, 1]} : vector<16x9xf32> to vector<16x1xf32>
    %28 = vector.broadcast %27 : vector<16x1xf32> to vector<16x256xf32>
    %29 = arith.mulf %26, %28 : vector<16x256xf32>
    %30 = arith.addf %25, %29 : vector<16x256xf32>
    %c16_i32_18 = arith.constant 16 : i32
    %31 = tpu.dynamic_rotate %21 by %c16_i32_18 dim 1 : vector<16x256xf32>, i32 -> vector<16x256xf32>
    %32 = vector.extract_strided_slice %11 {offsets = [0, 2], sizes = [16, 1], strides = [1, 1]} : vector<16x9xf32> to vector<16x1xf32>
    %33 = vector.broadcast %32 : vector<16x1xf32> to vector<16x256xf32>
    %34 = arith.mulf %31, %33 : vector<16x256xf32>
    %35 = arith.addf %30, %34 : vector<16x256xf32>
    %36 = vector.broadcast %14 : vector<1x256xf32> to vector<16x256xf32>
    %37 = arith.mulf %35, %36 : vector<16x256xf32>
    %38 = vector.extract_strided_slice %11 {offsets = [0, 3], sizes = [16, 1], strides = [1, 1]} : vector<16x9xf32> to vector<16x1xf32>
    %39 = vector.broadcast %38 : vector<16x1xf32> to vector<16x256xf32>
    %40 = arith.mulf %18, %39 : vector<16x256xf32>
    %41 = vector.extract_strided_slice %11 {offsets = [0, 4], sizes = [16, 1], strides = [1, 1]} : vector<16x9xf32> to vector<16x1xf32>
    %42 = vector.broadcast %41 : vector<16x1xf32> to vector<16x256xf32>
    %43 = arith.mulf %10, %42 : vector<16x256xf32>
    %44 = arith.addf %40, %43 : vector<16x256xf32>
    %45 = vector.extract_strided_slice %11 {offsets = [0, 5], sizes = [16, 1], strides = [1, 1]} : vector<16x9xf32> to vector<16x1xf32>
    %46 = vector.broadcast %45 : vector<16x1xf32> to vector<16x256xf32>
    %47 = arith.mulf %21, %46 : vector<16x256xf32>
    %48 = arith.addf %44, %47 : vector<16x256xf32>
    %c240_i32 = arith.constant 240 : i32
    %49 = tpu.dynamic_rotate %18 by %c240_i32 dim 1 : vector<16x256xf32>, i32 -> vector<16x256xf32>
    %50 = vector.extract_strided_slice %11 {offsets = [0, 6], sizes = [16, 1], strides = [1, 1]} : vector<16x9xf32> to vector<16x1xf32>
    %51 = vector.broadcast %50 : vector<16x1xf32> to vector<16x256xf32>
    %52 = arith.mulf %49, %51 : vector<16x256xf32>
    %c240_i32_19 = arith.constant 240 : i32
    %53 = tpu.dynamic_rotate %10 by %c240_i32_19 dim 1 : vector<16x256xf32>, i32 -> vector<16x256xf32>
    %54 = vector.extract_strided_slice %11 {offsets = [0, 7], sizes = [16, 1], strides = [1, 1]} : vector<16x9xf32> to vector<16x1xf32>
    %55 = vector.broadcast %54 : vector<16x1xf32> to vector<16x256xf32>
    %56 = arith.mulf %53, %55 : vector<16x256xf32>
    %57 = arith.addf %52, %56 : vector<16x256xf32>
    %c240_i32_20 = arith.constant 240 : i32
    %58 = tpu.dynamic_rotate %21 by %c240_i32_20 dim 1 : vector<16x256xf32>, i32 -> vector<16x256xf32>
    %59 = vector.extract_strided_slice %11 {offsets = [0, 8], sizes = [16, 1], strides = [1, 1]} : vector<16x9xf32> to vector<16x1xf32>
    %60 = vector.broadcast %59 : vector<16x1xf32> to vector<16x256xf32>
    %61 = arith.mulf %58, %60 : vector<16x256xf32>
    %62 = arith.addf %57, %61 : vector<16x256xf32>
    %63 = vector.broadcast %15 : vector<1x256xf32> to vector<16x256xf32>
    %64 = arith.mulf %62, %63 : vector<16x256xf32>
    %65 = arith.addf %37, %48 : vector<16x256xf32>
    %66 = arith.addf %65, %64 : vector<16x256xf32>
    %c0_21 = arith.constant 0 : index
    %c0_22 = arith.constant 0 : index
    %67 = vector.load %arg5[%c0_21, %c0_22] : memref<16x1xf32, #tpu.memory_space<vmem>>, vector<16x1xf32>
    %68 = vector.broadcast %67 : vector<16x1xf32> to vector<16x256xf32>
    %69 = arith.addf %66, %68 : vector<16x256xf32>
    %70 = arith.truncf %69 : vector<16x256xf32> to vector<16x256xbf16>
    %71 = tpu.concatenate %70, %2 in 0 : vector<16x256xbf16>, vector<16x256xbf16> -> vector<32x256xbf16>
    %c0_23 = arith.constant 0 : index
    %c0_24 = arith.constant 0 : index
    %72 = vector.load %arg6[%c0_23, %c0_24] : memref<32x32xbf16, #tpu.memory_space<vmem>>, vector<32x32xbf16>
    %cst_25 = arith.constant dense<0.000000e+00> : vector<32x256xf32>
    %73 = tpu.matmul %72, %71, %cst_25 {dimension_numbers = #tpu.dot_dimension_numbers<[1], [0], [0], [1], [0, 0, 1, 1], [], []>} : vector<32x32xbf16>, vector<32x256xbf16>, vector<32x256xf32> -> vector<32x256xf32>
    %c0_26 = arith.constant 0 : index
    %c0_27 = arith.constant 0 : index
    %74 = vector.load %arg7[%c0_26, %c0_27] : memref<32x1xf32, #tpu.memory_space<vmem>>, vector<32x1xf32>
    %75 = vector.broadcast %74 : vector<32x1xf32> to vector<32x256xf32>
    %76 = arith.addf %73, %75 : vector<32x256xf32>
    %c0_28 = arith.constant 0 : index
    %c0_29 = arith.constant 0 : index
    %77 = vector.load %arg12[%c0_28, %c0_29] : memref<32x1xf32, #tpu.memory_space<vmem>>, vector<32x1xf32>
    %78 = vector.broadcast %77 : vector<32x1xf32> to vector<32x256xf32>
    %79 = arith.mulf %76, %78 : vector<32x256xf32>
    %80 = arith.maximumf %76, %79 : vector<32x256xf32>
    %81 = arith.truncf %80 : vector<32x256xf32> to vector<32x256xbf16>
    %c0_30 = arith.constant 0 : index
    %c0_31 = arith.constant 0 : index
    %c0_32 = arith.constant 0 : index
    %82 = vector.load %arg13[%c0_30, %c0_31, %c0_32] : memref<1x32x256xbf16, #tpu.memory_space<vmem>>, vector<1x32x256xbf16>
    %83 = vector.shape_cast %82 : vector<1x32x256xbf16> to vector<32x256xbf16>
    %84 = vector.shape_cast %81 : vector<32x256xbf16> to vector<1x32x256xbf16>
    tpu.vector_store %arg13[%c0_30, %c0_31, %c0_32], %84 {strides = array<i32>} : memref<1x32x256xbf16, #tpu.memory_space<vmem>>, vector<1x32x256xbf16>,
    return
  }
  func.func @transform_0(%arg0: i32) -> (i32, i32, i32) {
    %c0_i32 = arith.constant 0 : i32
    %c0_i32_0 = arith.constant 0 : i32
    %c0_i32_1 = arith.constant 0 : i32
    return %arg0, %c0_i32, %c0_i32_0 : i32, i32, i32
  }
  func.func @transform_1(%arg0: i32) -> (i32, i32) {
    %c0_i32 = arith.constant 0 : i32
    %c0_i32_0 = arith.constant 0 : i32
    %c0_i32_1 = arith.constant 0 : i32
    return %c0_i32, %c0_i32_0 : i32, i32
  }
  func.func @transform_2(%arg0: i32) -> (i32, i32) {
    %c0_i32 = arith.constant 0 : i32
    %c0_i32_0 = arith.constant 0 : i32
    %c0_i32_1 = arith.constant 0 : i32
    return %c0_i32, %c0_i32_0 : i32, i32
  }
  func.func @transform_3(%arg0: i32) -> (i32, i32) {
    %c0_i32 = arith.constant 0 : i32
    %c0_i32_0 = arith.constant 0 : i32
    %c0_i32_1 = arith.constant 0 : i32
    return %c0_i32, %c0_i32_0 : i32, i32
  }
  func.func @transform_4(%arg0: i32) -> (i32, i32) {
    %c0_i32 = arith.constant 0 : i32
    %c0_i32_0 = arith.constant 0 : i32
    %c0_i32_1 = arith.constant 0 : i32
    return %c0_i32, %c0_i32_0 : i32, i32
  }
  func.func @transform_5(%arg0: i32) -> (i32, i32) {
    %c0_i32 = arith.constant 0 : i32
    %c0_i32_0 = arith.constant 0 : i32
    %c0_i32_1 = arith.constant 0 : i32
    return %c0_i32, %c0_i32_0 : i32, i32
  }
  func.func @transform_6(%arg0: i32) -> (i32, i32) {
    %c0_i32 = arith.constant 0 : i32
    %c0_i32_0 = arith.constant 0 : i32
    %c0_i32_1 = arith.constant 0 : i32
    return %c0_i32, %c0_i32_0 : i32, i32
  }
  func.func @transform_7(%arg0: i32) -> (i32, i32) {
    %c0_i32 = arith.constant 0 : i32
    %c0_i32_0 = arith.constant 0 : i32
    %c0_i32_1 = arith.constant 0 : i32
    return %c0_i32, %c0_i32_0 : i32, i32
  }
  func.func @transform_8(%arg0: i32) -> (i32, i32) {
    %c0_i32 = arith.constant 0 : i32
    %c0_i32_0 = arith.constant 0 : i32
    %c0_i32_1 = arith.constant 0 : i32
    return %c0_i32, %c0_i32_0 : i32, i32
  }
  func.func @transform_9(%arg0: i32) -> (i32, i32) {
    %c0_i32 = arith.constant 0 : i32
    %c0_i32_0 = arith.constant 0 : i32
    %c0_i32_1 = arith.constant 0 : i32
    return %c0_i32, %c0_i32_0 : i32, i32
  }
  func.func @transform_10(%arg0: i32) -> (i32, i32) {
    %c0_i32 = arith.constant 0 : i32
    %c0_i32_0 = arith.constant 0 : i32
    %c0_i32_1 = arith.constant 0 : i32
    return %c0_i32, %c0_i32_0 : i32, i32
  }
  func.func @transform_11(%arg0: i32) -> (i32, i32) {
    %c0_i32 = arith.constant 0 : i32
    %c0_i32_0 = arith.constant 0 : i32
    %c0_i32_1 = arith.constant 0 : i32
    return %c0_i32, %c0_i32_0 : i32, i32
  }
  func.func @transform_12(%arg0: i32) -> (i32, i32, i32) {
    %c0_i32 = arith.constant 0 : i32
    %c0_i32_0 = arith.constant 0 : i32
    %c0_i32_1 = arith.constant 0 : i32
    return %arg0, %c0_i32, %c0_i32_0 : i32, i32, i32
  }
}

</mosaic_0001>

<bundles_post_ra>
// kernel: inverted_residual_forward.1
= control target key start
LH: loop header
LB: loop body
LE: loop exit
PB: predicated region body
PF: predicated region fallthrough
CT: control target
= control target key end

     0   :  { %s1227_s21 = smov 0   ;;  %s1551_s0 = inlined_call_operand.vmem [shape: bf16[2,32,256], index: 0, kind: input, shape index: {}]   ;;  %s1552_s1 = inlined_call_operand.vmem [shape: bf16[16,16], index: 1, kind: input, shape index: {}]   ;;  %s1553_s2 = inlined_call_operand.vmem [shape: f32[16,1], index: 2, kind: input, shape index: {}]   ;;  %s1554_s3 = inlined_call_operand.vmem [shape: f32[16,9], index: 3, kind: input, shape index: {}]   ;;  %s1555_s4 = inlined_call_operand.vmem [shape: f32[16,1], index: 4, kind: input, shape index: {}]   ;;  %s1556_s5 = inlined_call_operand.vmem [shape: bf16[32,32], index: 5, kind: input, shape index: {}]   ;;  %s1557_s6 = inlined_call_operand.vmem [shape: f32[32,1], index: 6, kind: input, shape index: {}]   ;;  %s1558_s7 = inlined_call_operand.vmem [shape: f32[1,256], index: 7, kind: input, shape index: {}]   ;;  %s1559_s8 = inlined_call_operand.vmem [shape: f32[1,256], index: 8, kind: input, shape index: {}]   ;;  %s1560_s9 = inlined_call_operand.vmem [shape: f32[1,256], index: 9, kind: input, shape index: {}]   ;;  %s1561_s10 = inlined_call_operand.vmem [shape: f32[1,256], index: 10, kind: input, shape index: {}]   ;;  %s1562_s11 = inlined_call_operand.vmem [shape: f32[32,1], index: 11, kind: input, shape index: {}]   ;;  %s1563_s12 = inlined_call_operand.vmem [shape: bf16[2,32,256], index: 12, kind: output, shape index: {}]  }
   0x1 LB: > { %s1058_s22 = sadd.s32 4294967295, %s1147_s21   ;;  %p1062_p0 = scmp.ge.s32.totalorder %s1147_s21, 1  ;;  %s1147_s21 = sphi %s1227_s21, %s22_s21  }
   0x2   : > { %p362_p1 = scmp.lt.s32.totalorder %s1147_s21, 3 }
   0x4   : > { %p363_p2 = pnand %p1062_p0, %p362_p1 }
   0x5   : > { %p404_p3 = scmp.lt.s32.totalorder (!%p363_p2), %s1058_s22, 1  ;;  %s1157_s19 = smov (!%p363_p2), 127  }
   0x6   : > { %366 = sbr.rel (%p363_p2) target bundleno = 718 (0x2ce), region = 68  ;;  %s1158_s20 = smov (!%p363_p2), 1  }
   0x7   : > { %s1159_s23 = smov (!%p363_p2), 16   ;;  %s1161_s24 = smov (!%p363_p2), 112  }
   0xb   : > { %v1149_v0 = vmov 0   ;;  %v1240_v1 = vld [vmem:[%s1554_s3 + $0x8] sm:$0xff]  ;;  %v421_v2 = vld [vmem:[%s1553_s2] sm:$0xff]  ;;  %s1565_s22 = smov (!%p404_p3, %s1058_s22), 1  ;;  %v1150_v5 = vmov 1   ;;  %vm448_vm0 = vcmask 130048   ;;  %v513_v44 = vlaneseq }
   0xc   : > { %484 = vmatprep.mubr.bf16.mxu0 %v1149_v0  ;;  %1115 = vset.pattern.permute.xlu1 %v1149_v0  ;;  %s1083_s27 = sshll.u32 %s1565_s22, 5  ;;  %v422_v3 = vld [vmem:[%s1553_s2 + $0x8] sm:$0xff]  ;;  %v1135_v7 = vld [vmem:[%s1552_s1] sm:$0xff]   ;;  %v1151_v9 = vmov 2   ;;  %v1152_v10 = vmov 3   ;;  %v1153_v11 = vmov 4  }
   0xd   : > { %583 = vperm.xlu1 %1115, %v1240_v1   ;;  %1114 = vset.pattern.permute.xlu0 %v1149_v0  ;;  %s1259_s14 = scalar_lea.vmem %s1551_s0, %s1083_s27  ;;  %v1270_v8 = vld [vmem:[%s1554_s3] sm:$0xff]  ;;  %v1154_v12 = vmov 6   ;;  %v1155_v13 = vmov 7   ;;  %v1156_v14 = vmov 5   ;;  %v1160_v42 = vmov 8   ;;  %s413_s30 = scalar_lea.vmem %s1563_s12, %s1083_s27 }
   0xe   : > { %425 = vperm.xlu0 %1114, %v421_v2   ;;  %924 = vmatprep.mubr.bf16.mxu1 %v1149_v0  ;;  %v1132_v4 = vld [vmem:[%s1259_s14 + $0x14] ss:$8 sps:$4 sm:$0xff]   ;;  %v1134_v6 = vld [vmem:[%s1259_s14 + $0x10] ss:$8 sps:$4 sm:$0xff]   ;;  %v522_v47 = vshrl.u32 %v513_v44, 7  ;;  %v1327_v48 = vand.u32 127, %v513_v44 }
   0xf   : > { %466 = vmatprep.subr.bf16.mxu0 %v1132_v4  ;;  %v501_v51 = vld [vmem:[%s1558_s7] sm:$0x3]  ;;  %vm875_vm5 = vcmask 261120  }
  0x10   : > { %467 = vmatpush1.bf16.msra.mxu0 %v1134_v6  ;;  %v1329_v49 = vsub.s32 0, %v522_v47  ;;  %v1331_v50 = vsub.s32 1, %v522_v47  ;;  %vm515_vm1 = vcmp.lt.s32.totalorder %v1327_v48, 1  ;;  %v502_v56 = vld [vmem:[%s1559_s8] sm:$0x3]  ;;  %vm543_vm2 = vcmp.lt.s32.totalorder %v1327_v48, 127 }
  0x11   : > { %1117 = vset.pattern.permute.xlu1 %v1150_v5  ;;  %vm713_vm3 = vcmp.lt.s32.totalorder %v1327_v48, 112  ;;  %vm571_vm4 = vcmp.lt.s32.totalorder %v1327_v48, 16 }
  0x12   : > { %607 = vperm.xlu1 %1117, %v1240_v1   ;;  %430 = vperm.xlu0 %1114, %v422_v3   ;;  %v524_v54 = vrot.slane %v501_v51, %v1329_v49  ;;  %v528_v55 = vrot.slane %v501_v51, %v1331_v50  ;;  %v552_v63 = vrot.slane %v502_v56, %v1329_v49 }
  0x13   : > { %1070 = vmatmul.mubr.msk.bf16.vlgmr.msra.gmra.mxu0 %vm448_vm0, %v1135_v7 }
  0x14   : > { %914 = vmatprep.mubr.bf16.mxu0 %v1149_v0 }
  0x16   : > { %1118 = vset.pattern.permute.xlu1 %v1151_v9  ;;  %1116 = vset.pattern.permute.xlu0 %v1150_v5  ;;  %v556_v5 = vrot.slane %v502_v56, %v1331_v50  ;;  %v1138_v56 = vld [vmem:[%s1259_s14 + $0x4] ss:$8 sps:$4 sm:$0xff]  }
  0x17   : > { %631 = vperm.xlu1 %1118, %v1270_v8   ;;  %603 = vperm.xlu0 %1116, %v1270_v8  }
  0x18   : > { %894 = vmatprep.subr.bf16.mxu0 %v1138_v56  ;;  %1089 = vmatprep.subr.bf16.mxu1 %v1138_v56 }
  0x1b   : > { %1120 = vset.pattern.permute.xlu1 %v1152_v10  ;;  %1119 = vset.pattern.permute.xlu0 %v1151_v9 }
  0x1c   : > { %662 = vperm.xlu1 %1120, %v1270_v8   ;;  %635 = vperm.xlu0 %1119, %v1240_v1  }
  0x20   : > { %666 = vperm.xlu1 %1120, %v1240_v1   ;;  %1121 = vset.pattern.permute.xlu0 %v1153_v11 }
  0x21   : > { %674 = vperm.xlu0 %1121, %v1270_v8  }
  0x24   : > { %1122 = vset.pattern.permute.xlu1 %v1153_v11 }
  0x25   : > { %678 = vperm.xlu1 %1122, %v1240_v1   ;;  %1124 = vset.pattern.permute.xlu0 %v1154_v12 }
  0x26   : > { %723 = vperm.xlu0 %1124, %v1240_v1  }
  0x29   : > { %1123 = vset.pattern.permute.xlu1 %v1154_v12 }
  0x2a   : > { %719 = vperm.xlu1 %1123, %v1270_v8   ;;  %1126 = vset.pattern.permute.xlu0 %v1156_v14 }
  0x2e   : > { %1125 = vset.pattern.permute.xlu1 %v1155_v13 }
  0x2f   : > { %743 = vperm.xlu1 %1125, %v1270_v8  }
  0x88   : > { %v1283_v15 = vpop.permute.xlu1 %583 }
  0x89   : > { %v426_v16 = vpop.permute.xlu0 %425 }
  0x8d   : > { %v1285_v17 = vpop.permute.xlu1 %607  ;;  %v431_v18 = vpop.permute.xlu0 %430 }
  0x92   : > { %v1287_v19 = vpop.permute.xlu1 %631  ;;  %v1289_v20 = vpop.permute.xlu0 %603 }
  0x97   : > { %v1291_v21 = vpop.permute.xlu1 %662  ;;  %v1293_v22 = vpop.permute.xlu0 %635 }
  0x9b   : > { %v1295_v24 = vpop.permute.xlu1 %666 }
  0x9c   : > { %v675_v27 = vpop.permute.xlu0 %674 }
  0xa0   : > { %v679_v35 = vpop.permute.xlu1 %678 }
  0xa1   : > { %v1325_v46 = vpop.permute.xlu0 %723 }
  0xa5   : > { %v1321_v43 = vpop.permute.xlu1 %719 }
  0xaa   : > { %v1323_v45 = vpop.permute.xlu1 %743 }
  0xd3   : > { %v486_v23 = vpop.f32.mrf.mxu0 }
  0xd4   : > { %v487_v25 = vadd.f32 %v486_v23, %v426_v16 }
  0xd5   : > { %v488_v26 = vpop.f32.mrf.mxu0 }
  0xd6   : > { %v495_v28 = vmax.f32 %v487_v25, 0.0  ;;  %v489_v29 = vadd.f32 %v488_v26, %v426_v16 }
  0xd7   : > { %v490_v30 = vpop.f32.mrf.mxu0 }
  0xd8   : > { %v496_v31 = vmax.f32 %v489_v29, 0.0  ;;  %v1297_v32 = vmul.f32 %v675_v27, %v495_v28  ;;  %v491_v33 = vadd.f32 %v490_v30, %v431_v18  ;;  %535 = vrot.lane.b32.xlu0 %v495_v28, %s1157_s19  ;;  %505 = vrot.lane.b32.xlu1 %v495_v28, %s1158_s20 }
  0xd9   : > { %v492_v34 = vpop.f32.mrf.mxu0 }
  0xda   : > { %v1299_v36 = vmul.f32 %v675_v27, %v496_v31  ;;  %v497_v37 = vmax.f32 %v491_v33, 0.0  ;;  %v493_v38 = vadd.f32 %v492_v34, %v431_v18 }
  0xdc   : > { %v498_v39 = vmax.f32 %v493_v38, 0.0  ;;  %v1301_v40 = vmul.f32 %v679_v35, %v497_v37  ;;  %509 = vrot.lane.b32.xlu0 %v496_v31, %s1158_s20  ;;  %507 = vrot.lane.b32.xlu1 %v497_v37, %s1158_s20 }
  0xde   : > { %v1303_v41 = vmul.f32 %v679_v35, %v498_v39 }
  0xe0   : > { %539 = vrot.lane.b32.xlu0 %v496_v31, %s1157_s19  ;;  %537 = vrot.lane.b32.xlu1 %v497_v37, %s1157_s19 }
  0xe4   : > { %590 = vrot.lane.b32.xlu0 %v495_v28, %s1159_s23  ;;  %511 = vrot.lane.b32.xlu1 %v498_v39, %s1158_s20 }
  0xe8   : > { %594 = vrot.lane.b32.xlu0 %v496_v31, %s1159_s23  ;;  %541 = vrot.lane.b32.xlu1 %v498_v39, %s1157_s19 }
  0xec   : > { %690 = vperm.xlu0 %1126, %v1270_v8   ;;  %747 = vperm.xlu1 %1125, %v1240_v1  }
  0xf0   : > { %1129 = vset.pattern.permute.xlu0 %v1160_v42  ;;  %592 = vrot.lane.b32.xlu1 %v497_v37, %s1159_s23 }
  0xf1   : > { %775 = vperm.xlu0 %1129, %v1240_v1   ;;  %1127 = vset.pattern.permute.xlu1 %v1156_v14 }
  0xf4   : > { %694 = vperm.xlu1 %1127, %v1240_v1  }
  0xf5   : > { %1130 = vset.pattern.permute.xlu0 %v1149_v0 }
  0xf6   : > { %578 = vperm.xlu0 %1130, %v1270_v8  }
  0xf8   : > { %1128 = vset.pattern.permute.xlu1 %v1160_v42  ;;  %v842_v42 = vld [vmem:[%s1557_s6 + $0x8] sm:$0xff] }
  0xf9   : > { %771 = vperm.xlu1 %1128, %v1270_v8  }
  0xfa   : > { %730 = vrot.lane.b32.xlu0 %v495_v28, %s1161_s24 }
  0xfd   : > { %732 = vrot.lane.b32.xlu1 %v497_v37, %s1161_s24 }
  0xfe   : > { %734 = vrot.lane.b32.xlu0 %v496_v31, %s1161_s24  ;;  %1131 = vset.pattern.permute.xlu1 %v1149_v0 }
 0x101   : > { %596 = vrot.lane.b32.xlu1 %v498_v39, %s1159_s23 }
 0x105   : > { %736 = vrot.lane.b32.xlu1 %v498_v39, %s1161_s24  ;;  %v809_v39 = vld [vmem:[%s1555_s4] sm:$0xff] }
 0x14a   : > { %v536_v52 = vpop.permute.xlu0 %535  ;;  %v506_v53 = vpop.permute.xlu1 %505 }
 0x14e   : > { %v510_v57 = vpop.permute.xlu0 %509  ;;  %v508_v58 = vpop.permute.xlu1 %507 }
 0x14f   : > { %v516_v59 = vsel %vm515_vm1, %v506_v53, %v510_v57  ;;  %v518_v60 = vsel %vm515_vm1, %v510_v57, %v506_v53  ;;  %v1136_v57 = vld [vmem:[%s1259_s14] ss:$8 sps:$4 sm:$0xff]  }
 0x150   : > { %v531_v61 = vmul.f32 %v524_v54, %v518_v60  ;;  %v532_v62 = vmul.f32 %v528_v55, %v516_v59  ;;  %v810_v59 = vld [vmem:[%s1555_s4 + $0x8] sm:$0xff]  ;;  %895 = vmatpush1.bf16.msra.mxu0 %v1136_v57  ;;  %1091 = vmatpush1.bf16.msra.mxu1 %v1136_v57 }
 0x152   : > { %v669_v0 = vmul.f32 %v1291_v21, %v531_v61  ;;  %v670_v1 = vmul.f32 %v1291_v21, %v532_v62  ;;  %v540_v2 = vpop.permute.xlu0 %539  ;;  %563 = vrot.lane.b32.xlu0 %v531_v61, %s1159_s23  ;;  %v538_v3 = vpop.permute.xlu1 %537 }
 0x153   : > { %v544_v4 = vsel %vm543_vm2, %v536_v52, %v540_v2  ;;  %v546_v9 = vsel %vm543_vm2, %v540_v2, %v536_v52  ;;  %v841_v2 = vld [vmem:[%s1557_s6] sm:$0xff] }
 0x154   : > { %v559_v6 = vmul.f32 %v552_v63, %v544_v4  ;;  %v685_v7 = vadd.f32 %v1297_v32, %v669_v0  ;;  %v686_v8 = vadd.f32 %v1299_v36, %v670_v1  ;;  %v560_v13 = vmul.f32 %v556_v5, %v546_v9  ;;  %v938_v1 = vld [vmem:[%s1562_s11 + $0x18] sm:$0xff]  ;;  %v935_v4 = vld [vmem:[%s1562_s11] sm:$0xff] }
 0x156   : > { %618 = vrot.lane.b32.xlu1 %v559_v6, %s1159_s23  ;;  %567 = vrot.lane.b32.xlu0 %v532_v62, %s1159_s23  ;;  %v512_v10 = vpop.permute.xlu1 %511  ;;  %v1368_v25 = vpop.permute.xlu0 %590 }
 0x157   : > { %v517_v11 = vsel %vm515_vm1, %v508_v58, %v512_v10  ;;  %v519_v12 = vsel %vm515_vm1, %v512_v10, %v508_v58  ;;  %v936_v58 = vld [vmem:[%s1562_s11 + $0x8] sm:$0xff] }
 0x158   : > { %v533_v14 = vmul.f32 %v524_v54, %v519_v12  ;;  %v534_v16 = vmul.f32 %v528_v55, %v517_v11  ;;  %v844_v54 = vld [vmem:[%s1557_s6 + $0x18] sm:$0xff] }
 0x15a   : > { %v671_v18 = vmul.f32 %v1295_v24, %v533_v14  ;;  %v672_v21 = vmul.f32 %v1295_v24, %v534_v16  ;;  %622 = vrot.lane.b32.xlu0 %v560_v13, %s1159_s23  ;;  %565 = vrot.lane.b32.xlu1 %v533_v14, %s1159_s23  ;;  %v542_v23 = vpop.permute.xlu1 %541  ;;  %v1380_v30 = vpop.permute.xlu0 %594 }
 0x15b   : > { %v545_v26 = vsel %vm543_vm2, %v538_v3, %v542_v23  ;;  %v547_v24 = vsel %vm543_vm2, %v542_v23, %v538_v3  ;;  %v843_v3 = vld [vmem:[%s1557_s6 + $0x10] sm:$0xff]  ;;  %v598_v12 = vsel %vm571_vm4, %v1368_v25, %v1380_v30  ;;  %v503_v23 = vld [vmem:[%s1560_s9] sm:$0x3] }
 0x15c   : > { %v687_v27 = vadd.f32 %v1301_v40, %v671_v18  ;;  %v688_v28 = vadd.f32 %v1303_v41, %v672_v21  ;;  %v561_v29 = vmul.f32 %v552_v63, %v545_v26  ;;  %v562_v31 = vmul.f32 %v556_v5, %v547_v24 }
 0x15d   : > { %v654_v24 = vrot.slane %v503_v23, %v1331_v50 }
 0x15e   : > { %705 = vrot.lane.b32.xlu0 %v531_v61, %s1161_s24  ;;  %569 = vrot.lane.b32.xlu1 %v534_v16, %s1159_s23 }
 0x162   : > { %709 = vrot.lane.b32.xlu0 %v532_v62, %s1161_s24  ;;  %620 = vrot.lane.b32.xlu1 %v561_v29, %s1159_s23 }
 0x166   : > { %758 = vrot.lane.b32.xlu0 %v559_v6, %s1161_s24  ;;  %624 = vrot.lane.b32.xlu1 %v562_v31, %s1159_s23 }
 0x167   : > { %v691_v32 = vpop.permute.xlu0 %690  ;;  %v1384_v33 = vpop.permute.xlu1 %747 }
 0x168   : > { %v697_v34 = vmul.f32 %v691_v32, %v559_v6  ;;  %v698_v35 = vmul.f32 %v691_v32, %v560_v13 }
 0x16a   : > { %v1386_v36 = vadd.f32 %v697_v34, %v685_v7  ;;  %v1388_v37 = vadd.f32 %v698_v35, %v686_v8  ;;  %762 = vrot.lane.b32.xlu0 %v560_v13, %s1161_s24  ;;  %707 = vrot.lane.b32.xlu1 %v533_v14, %s1161_s24  ;;  %v600_v13 = vsel %vm571_vm4, %v1380_v30, %v1368_v25 }
 0x16b   : > { %v1392_v38 = vpop.permute.xlu1 %592  ;;  %v610_v26 = vmul.f32 %v1289_v20, %v600_v13  ;;  %v650_v25 = vrot.slane %v503_v23, %v1329_v49 }
 0x16c   : > { %v1397_v40 = vpop.permute.xlu0 %775 }
 0x16e   : > { %813 = vperm.xlu0 %1130, %v809_v39   ;;  %711 = vrot.lane.b32.xlu1 %v534_v16, %s1161_s24 }
 0x16f   : > { %v695_v41 = vpop.permute.xlu1 %694 }
 0x170   : > { %v699_v44 = vmul.f32 %v695_v41, %v561_v29  ;;  %v700_v47 = vmul.f32 %v695_v41, %v562_v31 }
 0x171   : > { %v579_v51 = vpop.permute.xlu0 %578 }
 0x172   : > { %v1403_v52 = vadd.f32 %v699_v44, %v687_v27  ;;  %v1405_v53 = vadd.f32 %v700_v47, %v688_v28  ;;  %852 = vperm.xlu0 %1130, %v842_v42   ;;  %760 = vrot.lane.b32.xlu1 %v561_v29, %s1161_s24  ;;  %v611_v27 = vmul.f32 %v1289_v20, %v598_v12 }
 0x174   : > { %v1442_v5 = vpop.permute.xlu1 %771 }
 0x175   : > { %v731_v55 = vpop.permute.xlu0 %730 }
 0x176   : > { %862 = vperm.xlu0 %1130, %v844_v54   ;;  %764 = vrot.lane.b32.xlu1 %v562_v31, %s1161_s24 }
 0x178   : > { %v1444_v6 = vpop.permute.xlu1 %732 }
 0x179   : > { %v735_v60 = vpop.permute.xlu0 %734 }
 0x17a   : > { %v738_v61 = vsel %vm713_vm3, %v731_v55, %v735_v60  ;;  %v740_v62 = vsel %vm713_vm3, %v735_v60, %v731_v55  ;;  %946 = vperm.xlu0 %1130, %v936_v58   ;;  %818 = vperm.xlu1 %1131, %v810_v59  }
 0x17b   : > { %v750_v63 = vmul.f32 %v1323_v45, %v738_v61  ;;  %v751_v0 = vmul.f32 %v1323_v45, %v740_v62  ;;  %v937_v45 = vld [vmem:[%s1562_s11 + $0x10] sm:$0xff] }
 0x17c   : > { %v597_v7 = vpop.permute.xlu1 %596 }
 0x17d   : > { %v601_v60 = vsel %vm571_vm4, %v597_v7, %v1392_v38 }
 0x17e   : > { %956 = vperm.xlu0 %1130, %v938_v1   ;;  %847 = vperm.xlu1 %1131, %v841_v2  }
 0x180   : > { %v1446_v8 = vpop.permute.xlu1 %736 }
 0x182   : > { %857 = vperm.xlu1 %1131, %v843_v3   ;;  %v612_v3 = vmul.f32 %v1285_v17, %v601_v60 }
 0x186   : > { %941 = vperm.xlu1 %1131, %v935_v4  }
 0x18a   : > { %951 = vperm.xlu1 %1131, %v937_v45  }
 0x1c4   : > { %v564_v9 = vpop.permute.xlu0 %563 }
 0x1c8   : > { %v568_v10 = vpop.permute.xlu0 %567  ;;  %v619_v11 = vpop.permute.xlu1 %618 }
 0x1c9   : > { %v572_v14 = vsel %vm571_vm4, %v564_v9, %v568_v10  ;;  %v574_v16 = vsel %vm571_vm4, %v568_v10, %v564_v9 }
 0x1ca   : > { %v586_v18 = vmul.f32 %v579_v51, %v574_v16  ;;  %v587_v21 = vmul.f32 %v579_v51, %v572_v14 }
 0x1cc   : > { %v623_v28 = vpop.permute.xlu0 %622  ;;  %v566_v29 = vpop.permute.xlu1 %565  ;;  %v614_v32 = vadd.f32 %v610_v26, %v586_v18  ;;  %v615_v34 = vadd.f32 %v611_v27, %v587_v21 }
 0x1cd   : > { %v626_v30 = vsel %vm571_vm4, %v619_v11, %v623_v28  ;;  %v628_v31 = vsel %vm571_vm4, %v623_v28, %v619_v11 }
 0x1ce   : > { %v638_v35 = vmul.f32 %v1287_v19, %v628_v31  ;;  %v639_v39 = vmul.f32 %v1287_v19, %v626_v30  ;;  %v599_v19 = vsel %vm571_vm4, %v1392_v38, %v597_v7 }
 0x1cf   : > { %v613_v4 = vmul.f32 %v1285_v17, %v599_v19  ;;  %v504_v17 = vld [vmem:[%s1561_s10] sm:$0x3] }
 0x1d0   : > { %v642_v41 = vadd.f32 %v638_v35, %v614_v32  ;;  %v643_v20 = vadd.f32 %v639_v39, %v615_v34  ;;  %v706_v42 = vpop.permute.xlu0 %705  ;;  %v570_v44 = vpop.permute.xlu1 %569  ;;  %v790_v23 = vrot.slane %v504_v17, %v1329_v49  ;;  %v794_v26 = vrot.slane %v504_v17, %v1331_v50 }
 0x1d1   : > { %v573_v54 = vsel %vm571_vm4, %v566_v29, %v570_v44  ;;  %v575_v55 = vsel %vm571_vm4, %v570_v44, %v566_v29 }
 0x1d2   : > { %v657_v47 = vmul.f32 %v650_v25, %v642_v41  ;;  %v658_v51 = vmul.f32 %v654_v24, %v643_v20  ;;  %v588_v1 = vmul.f32 %v1283_v15, %v575_v55 }
 0x1d4   : > { %v710_v56 = vpop.permute.xlu0 %709  ;;  %v621_v57 = vpop.permute.xlu1 %620  ;;  %v801_v58 = vadd.f32 %v1386_v36, %v657_v47  ;;  %v802_v59 = vadd.f32 %v1388_v37, %v658_v51  ;;  %v589_v36 = vmul.f32 %v1283_v15, %v573_v54  ;;  %v616_v12 = vadd.f32 %v612_v3, %v588_v1 }
 0x1d5   : > { %v714_v61 = vsel %vm713_vm3, %v706_v42, %v710_v56  ;;  %v716_v62 = vsel %vm713_vm3, %v710_v56, %v706_v42 }
 0x1d6   : > { %v726_v37 = vmul.f32 %v1321_v43, %v714_v61  ;;  %v727_v2 = vmul.f32 %v1321_v43, %v716_v62  ;;  %v617_v15 = vadd.f32 %v613_v4, %v589_v36  ;;  %v1140_v4 = vld [vmem:[%s1556_s5 + $0x8] sm:$0xff]  }
 0x1d8   : > { %v754_v45 = vadd.f32 %v750_v63, %v726_v37  ;;  %v755_v38 = vadd.f32 %v751_v0, %v727_v2  ;;  %v759_v7 = vpop.permute.xlu0 %758  ;;  %v625_v9 = vpop.permute.xlu1 %624 }
 0x1d9   : > { %v627_v10 = vsel %vm571_vm4, %v621_v57, %v625_v9  ;;  %v629_v11 = vsel %vm571_vm4, %v625_v9, %v621_v57 }
 0x1da   : > { %v640_v13 = vmul.f32 %v1293_v22, %v629_v11  ;;  %v641_v43 = vmul.f32 %v1293_v22, %v627_v10 }
 0x1dc   : > { %v644_v63 = vadd.f32 %v640_v13, %v616_v12  ;;  %v645_v0 = vadd.f32 %v641_v43, %v617_v15  ;;  %v763_v14 = vpop.permute.xlu0 %762  ;;  %v708_v16 = vpop.permute.xlu1 %707 }
 0x1dd   : > { %v766_v18 = vsel %vm713_vm3, %v759_v7, %v763_v14  ;;  %v768_v21 = vsel %vm713_vm3, %v763_v14, %v759_v7 }
 0x1de   : > { %v659_v27 = vmul.f32 %v650_v25, %v644_v63  ;;  %v660_v22 = vmul.f32 %v654_v24, %v645_v0  ;;  %v778_v28 = vmul.f32 %v1442_v5, %v766_v18  ;;  %v779_v29 = vmul.f32 %v1442_v5, %v768_v21 }
 0x1df   : > { %v739_v5 = vsel %vm713_vm3, %v1444_v6, %v1446_v8 }
 0x1e0   : > { %v782_v30 = vadd.f32 %v778_v28, %v754_v45  ;;  %v783_v31 = vadd.f32 %v779_v29, %v755_v38  ;;  %v712_v32 = vpop.permute.xlu1 %711  ;;  %v803_v34 = vadd.f32 %v1403_v52, %v659_v27  ;;  %v804_v35 = vadd.f32 %v1405_v53, %v660_v22 }
 0x1e1   : > { %v715_v49 = vsel %vm713_vm3, %v708_v16, %v712_v32  ;;  %v717_v50 = vsel %vm713_vm3, %v712_v32, %v708_v16  ;;  %v741_v52 = vsel %vm713_vm3, %v1446_v8, %v1444_v6  ;;  %v752_v44 = vmul.f32 %v1384_v33, %v739_v5 }
 0x1e2   : > { %v797_v39 = vmul.f32 %v790_v23, %v782_v30  ;;  %v798_v41 = vmul.f32 %v794_v26, %v783_v31  ;;  %v728_v53 = vmul.f32 %v1325_v46, %v715_v49  ;;  %v729_v42 = vmul.f32 %v1325_v46, %v717_v50 }
 0x1e3   : > { %v753_v47 = vmul.f32 %v1384_v33, %v741_v52 }
 0x1e4   : > { %v761_v25 = vpop.permute.xlu1 %760  ;;  %v805_v24 = vadd.f32 %v801_v58, %v797_v39  ;;  %v806_v20 = vadd.f32 %v802_v59, %v798_v41  ;;  %v756_v56 = vadd.f32 %v752_v44, %v728_v53 }
 0x1e5   : > { %v757_v57 = vadd.f32 %v753_v47, %v729_v42 }
 0x1e8   : > { %v765_v51 = vpop.permute.xlu1 %764 }
 0x1e9   : > { %v767_v54 = vsel %vm713_vm3, %v761_v25, %v765_v51  ;;  %v769_v55 = vsel %vm713_vm3, %v765_v51, %v761_v25  ;;  %v814_v33 = vpop.permute.xlu0 %813 }
 0x1ea   : > { %v780_v58 = vmul.f32 %v1397_v40, %v767_v54  ;;  %v781_v6 = vmul.f32 %v1397_v40, %v769_v55  ;;  %v821_v1 = vadd.f32 %v814_v33, %v805_v24  ;;  %v822_v36 = vadd.f32 %v814_v33, %v806_v20  ;;  %v1139_v40 = vld [vmem:[%s1556_s5] sm:$0xff]  }
 0x1ec   : > { %v784_v8 = vadd.f32 %v780_v58, %v756_v56  ;;  %v785_v59 = vadd.f32 %v781_v6, %v757_v57 }
 0x1ed   : > { %v853_v38 = vpop.permute.xlu0 %852 }
 0x1ee   : > { %v799_v46 = vmul.f32 %v790_v23, %v784_v8  ;;  %v800_v19 = vmul.f32 %v794_v26, %v785_v59 }
 0x1f0   : > { %v807_v60 = vadd.f32 %v803_v34, %v799_v46  ;;  %v808_v61 = vadd.f32 %v804_v35, %v800_v19 }
 0x1f1   : > { %v863_v9 = vpop.permute.xlu0 %862 }
 0x1f5   : > { %v819_v62 = vpop.permute.xlu1 %818  ;;  %v947_v15 = vpop.permute.xlu0 %946 }
 0x1f6   : > { %v823_v37 = vadd.f32 %v819_v62, %v807_v60  ;;  %v824_v2 = vadd.f32 %v819_v62, %v808_v61 }
 0x1f8   : > { %v825_v48 = vpack.c.bf16 %v823_v37, %v821_v1  ;;  %v826_v3 = vpack.c.bf16 %v824_v2, %v822_v36 }
 0x1f9   : > { %v848_v45 = vpop.permute.xlu1 %847  ;;  %v957_v35 = vpop.permute.xlu0 %956 }
 0x1fa   : > { %896 = vmatprep.subr.bf16.mxu0 %v826_v3  ;;  %1090 = vmatprep.subr.bf16.mxu1 %v826_v3 }
 0x1fb   : > { %897 = vmatpush1.bf16.msra.mxu0 %v825_v48  ;;  %1092 = vmatpush1.bf16.msra.mxu1 %v825_v48 }
 0x1fd   : > { %v858_v7 = vpop.permute.xlu1 %857 }
 0x1fe   : > { %1075 = vmatmul.mubr.msk.bf16.vlgmr.msra.gmra.mxu0 %vm875_vm5, %v1139_v40  ;;  %1076 = vmatmul.mubr.msk.bf16.vlgmr.msra.gmra.mxu1 %vm875_vm5, %v1140_v4 }
 0x201   : > { %v942_v10 = vpop.permute.xlu1 %941 }
 0x205   : > { %v952_v13 = vpop.permute.xlu1 %951 }
 0x2be   : > { %v916_v11 = vpop.f32.mrf.mxu0  ;;  %v926_v12 = vpop.f32.mrf.mxu1 }
 0x2bf   : > { %v917_v43 = vadd.f32 %v916_v11, %v848_v45  ;;  %v927_v17 = vadd.f32 %v926_v12, %v858_v7 }
 0x2c0   : > { %v918_v63 = vpop.f32.mrf.mxu0  ;;  %v928_v0 = vpop.f32.mrf.mxu1 }
 0x2c1   : > { %v959_v14 = vmul.f32 %v942_v10, %v917_v43  ;;  %v963_v16 = vmul.f32 %v952_v13, %v927_v17  ;;  %v919_v18 = vadd.f32 %v918_v63, %v848_v45  ;;  %v929_v21 = vadd.f32 %v928_v0, %v858_v7 }
 0x2c2   : > { %v920_v23 = vpop.f32.mrf.mxu0  ;;  %v930_v26 = vpop.f32.mrf.mxu1 }
 0x2c3   : > { %v960_v27 = vmul.f32 %v942_v10, %v919_v18  ;;  %v964_v22 = vmul.f32 %v952_v13, %v929_v21  ;;  %v967_v28 = vmax.f32 %v917_v43, %v959_v14  ;;  %v971_v29 = vmax.f32 %v927_v17, %v963_v16 }
 0x2c4   : > { %v921_v30 = vadd.f32 %v920_v23, %v853_v38  ;;  %v931_v31 = vadd.f32 %v930_v26, %v863_v9  ;;  %v922_v32 = vpop.f32.mrf.mxu0  ;;  %v932_v34 = vpop.f32.mrf.mxu1 }
 0x2c5   : > { %v968_v39 = vmax.f32 %v919_v18, %v960_v27  ;;  %v972_v41 = vmax.f32 %v929_v21, %v964_v22  ;;  %v923_v49 = vadd.f32 %v922_v32, %v853_v38  ;;  %v933_v50 = vadd.f32 %v932_v34, %v863_v9 }
 0x2c6   : > { %v961_v25 = vmul.f32 %v947_v15, %v921_v30  ;;  %v965_v24 = vmul.f32 %v957_v35, %v931_v31 }
 0x2c7   : > { %v1085_v20 = vpack.c.bf16 %v968_v39, %v967_v28  ;;  %v1087_v5 = vpack.c.bf16 %v972_v41, %v971_v29  ;;  %v962_v52 = vmul.f32 %v947_v15, %v923_v49  ;;  %v966_v53 = vmul.f32 %v957_v35, %v933_v50 }
 0x2c8   : > { %v969_v42 = vmax.f32 %v921_v30, %v961_v25  ;;  %v973_v44 = vmax.f32 %v931_v31, %v965_v24 }
 0x2c9   : > { %999 = vst [vmem:[%s413_s30] sm:$0xff] %v1085_v20  ;;  %1001 = vst [vmem:[%s413_s30 + $0x10] sm:$0xff] %v1087_v5  ;;  %v970_v47 = vmax.f32 %v923_v49, %v962_v52  ;;  %v974_v51 = vmax.f32 %v933_v50, %v966_v53 }
 0x2cb   : > { %v1086_v54 = vpack.c.bf16 %v970_v47, %v969_v42  ;;  %v1088_v55 = vpack.c.bf16 %v974_v51, %v973_v44 }
 0x2cd   : > { %1000 = vst [vmem:[%s413_s30 + $0x8] sm:$0xff] %v1086_v54  ;;  %1002 = vst [vmem:[%s413_s30 + $0x18] sm:$0xff] %v1088_v55 }
 0x2ce PF: > { %s22_s21 = sadd.s32 1, %s1147_s21  }
 0x2cf   : > { %p19_p4 = scmp.ge.s32.totalorder %s22_s21, 4  }
 0x2d1   :  { %21 = sbr.rel (!%p19_p4) target bundleno = 1 (0x1), region = 98 }

</bundles_post_ra>
